<compile_context>
chip_gen: v7x
topology: tpu7x:2x2x1
jax: 0.10.0
libtpu: 0.0.40
codegen_flags: <defaults>
</compile_context>

<pallas_src>
import math

import jax
import jax.numpy as jnp
from jax.experimental import pallas as pl
from jax.experimental.pallas import tpu as pltpu

_LANES = 128
# Per-input block byte target (DMA bytes per grid step stay constant per dtype).
_TARGET_BLOCK_BYTES = 4 * 1024 * 1024
# 2 inputs x 2 buffers x 4 MiB = 16 MiB of pipeline buffers (+ small scratch).
_VMEM_LIMIT_BYTES = 32 * 1024 * 1024
# Inner reduction chunk (rows): bounds vreg/VMEM intermediates per iteration.
_STRIP_ROWS = 512


def _round_up(x: int, m: int) -> int:
    return ((x + m - 1) // m) * m


def _make_sse_kernel(rows: int, row_tile: int, steps: int, needs_mask: bool,
                     cols: int, strip: int):
    """Per-core partial sum of squared error, accumulated into a (1,8,cols) block."""
    nstrips = row_tile // strip

    def kernel(o_ref, l_ref, out_ref):
        c = pl.program_id(0)  # "parallel" axis (sharded across TensorCores on v7x)
        i = pl.program_id(1)  # reduction axis ("arbitrary")

        @pl.when(i == 0)
        def _():
            out_ref[...] = jnp.zeros_like(out_ref)

        # Logical (unclamped) row offset of this block.
        base = (c * steps + i) * row_tile

        def accumulate(masked):
            def strip_body(s, acc):
                r0 = pl.multiple_of(s * strip, strip)
                o = o_ref[pl.ds(r0, strip), :].astype(jnp.float32)
                l = l_ref[pl.ds(r0, strip), :].astype(jnp.float32)
                d = o - l
                sq = d * d
                if masked:
                    # Rows at/after `rows` (boundary padding or replayed clamped
                    # blocks) must not contribute; select -> stale NaNs are safe.
                    row_ids = (base + r0) + jax.lax.broadcasted_iota(
                        jnp.int32, (strip, cols), 0)
                    sq = jnp.where(row_ids < rows, sq, 0.0)
                # Fold the strip onto an (8, cols) register accumulator (VPU adds).
                return acc + jnp.sum(sq.reshape(strip // 8, 8, cols), axis=0)

            acc = jax.lax.fori_loop(0, nstrips, strip_body,
                                    jnp.zeros((8, cols), jnp.float32))
            out_ref[...] += acc[None, :, :]

        if needs_mask:
            # Only the block(s) that extend past `rows` pay the iota/compare/select.
            in_range = base + row_tile <= rows

            @pl.when(in_range)
            def _():
                accumulate(masked=False)

            @pl.when(jnp.logical_not(in_range))
            def _():
                accumulate(masked=True)
        else:
            accumulate(masked=False)

    return kernel


def loss_rmse(outputs: jax.Array, label: jax.Array, *,
              block_bytes: int = _TARGET_BLOCK_BYTES) -> jax.Array:
    """sqrt(mean((outputs - label)^2)) — forward of Loss_RMSE."""
    assert outputs.shape == label.shape, "outputs and label must have identical shapes"
    n = math.prod(outputs.shape)
    if n == 0:
        return jnp.float32(float("nan"))  # torch.mean of an empty tensor -> nan

    o_flat = outputs.reshape(-1)
    l_flat = label.reshape(-1)

    cols = _LANES
    rows = n // cols
    rem = n - rows * cols

    if rows < 8:
        # Tiny input: not worth a kernel launch.
        d = o_flat.astype(jnp.float32) - l_flat.astype(jnp.float32)
        return jnp.sqrt(jnp.sum(d * d) / jnp.float32(n))

    # Sub-lane-width tail (< 128 elements, usually empty): computed in plain JAX.
    if rem:
        o_tail = o_flat[rows * cols:].astype(jnp.float32)
        l_tail = l_flat[rows * cols:].astype(jnp.float32)
        tail_sse = jnp.sum((o_tail - l_tail) ** 2)
        # Prefix slice (one extra HBM copy per input) only when n % 128 != 0.
        o_body = o_flat[: rows * cols]
        l_body = l_flat[: rows * cols]
    else:
        tail_sse = jnp.float32(0.0)
        o_body = o_flat
        l_body = l_flat

    itemsize = jnp.dtype(outputs.dtype).itemsize
    min_sub = {4: 8, 2: 16, 1: 32}.get(itemsize, 8)  # dtype-aware sublane tile
    # dtype-aware row tile: keep DMA bytes per grid step ~constant across dtypes.
    row_tile_cap = max(min_sub, block_bytes // (cols * itemsize))
    row_tile = min(row_tile_cap, _round_up(rows, min_sub))
    strip = min(_STRIP_ROWS, row_tile)
    row_tile = _round_up(row_tile, strip)  # strip must divide row_tile
    nblocks = pl.cdiv(rows, row_tile)

    # Shard the reduction across 2 TensorCores (v7x); harmless on 1-TC chips.
    ncores = 2 if nblocks >= 2 else 1
    steps = pl.cdiv(nblocks, ncores)
    covered_rows = ncores * steps * row_tile
    needs_mask = covered_rows != rows

    if ncores * steps == nblocks:
        def in_map(c, i):
            return (c * steps + i, 0)
    else:
        # Odd block count: core 1's last logical block is out of range.  Clamp to
        # the previous block index — Pallas elides the duplicate DMA (same block
        # as the preceding step) and the kernel masks its contribution to zero.
        def in_map(c, i):
            return (jnp.minimum(c * steps + i, nblocks - 1), 0)

    o2d = o_body.reshape(rows, cols)
    l2d = l_body.reshape(rows, cols)

    partials = pl.pallas_call(
        _make_sse_kernel(rows, row_tile, steps, needs_mask, cols, strip),
        out_shape=jax.ShapeDtypeStruct((ncores, 8, cols), jnp.float32),
        grid_spec=pltpu.PrefetchScalarGridSpec(
            num_scalar_prefetch=0,
            grid=(ncores, steps),
            in_specs=[
                pl.BlockSpec((row_tile, cols), in_map),
                pl.BlockSpec((row_tile, cols), in_map),
            ],
            out_specs=pl.BlockSpec((1, 8, cols), lambda c, i: (c, 0, 0)),
        ),
        compiler_params=pltpu.CompilerParams(
            dimension_semantics=("parallel", "arbitrary"),
            vmem_limit_bytes=_VMEM_LIMIT_BYTES,
        ),
        cost_estimate=pl.CostEstimate(
            flops=3 * rows * cols,
            transcendentals=0,
            bytes_accessed=2 * rows * cols * itemsize + ncores * 8 * cols * 4,
        ),
    )(o2d, l2d)

    total_sse = jnp.sum(partials) + tail_sse
    return jnp.sqrt(total_sse / jnp.float32(n))


if __name__ == "__main__":
    key = jax.random.PRNGKey(0)

    def check(shape, k, rtol=1e-5, atol=1e-6, **kw):
        k1, k2 = jax.random.split(k)
        outputs = jax.random.normal(k1, shape, dtype=jnp.float32)
        label = jax.random.normal(k2, shape, dtype=jnp.float32)
        got = loss_rmse(outputs, label, **kw)
        jax.block_until_ready(got)
        ref = jnp.sqrt(jnp.mean((outputs - label) ** 2))
        assert jnp.allclose(got, ref, rtol=rtol, atol=atol), (shape, got, ref)

    keys = jax.random.split(key, 6)
    # Primary small shape consistent with an image-restoration loss (NCHW).
    check((2, 4, 16, 16), keys[0])        # single block, exact fit, default 4 MiB tiles
    check((4, 5, 55), keys[1])            # n % 128 != 0: JAX tail path
    check((1, 1, 3, 33), keys[2])         # tiny input: pure-JAX fallback
    # Small block_bytes override exercises the multi-block / 2-core / gated-mask /
    # clamped-replay code paths at small sizes (production default is 4 MiB blocks).
    check((2, 4, 160, 128), keys[3], block_bytes=64 * 1024)  # even block split, no mask
    check((2, 4, 50, 128), keys[4], block_bytes=64 * 1024)   # partial last block (gated mask)
    check((2, 4, 48, 128), keys[5], block_bytes=64 * 1024)   # odd block count (clamped replay)

    print("KERNEL_OK")
</pallas_src>

<mosaic_0001>
module attributes {stable_mosaic.version = 11 : i64} {
  func.func @kernel(%arg0: i32, %arg1: i32, %arg2: memref<16x128xf32, #tpu.memory_space<vmem>>, %arg3: memref<16x128xf32, #tpu.memory_space<vmem>>, %arg4: memref<1x8x128xf32, #tpu.memory_space<vmem>>) attributes {dimension_semantics = [#tpu.dimension_semantics<parallel>, #tpu.dimension_semantics<arbitrary>], iteration_bounds = array<i64: 1, 1>, scalar_prefetch = 0 : i64, scratch_operands = 0 : i64, tpu.core_type = #tpu.core_type<tc>, window_params = [{transform_indices = @transform_0, window_bounds = array<i64: 16, 128>}, {transform_indices = @transform_1, window_bounds = array<i64: 16, 128>}, {transform_indices = @transform_2, window_bounds = array<i64: 1, 8, 128>}]} {
    %c0_i32 = arith.constant 0 : i32
    %0 = arith.cmpi eq, %arg1, %c0_i32 : i32
    %1 = arith.extui %0 : i1 to i32
    %c0_i32_0 = arith.constant 0 : i32
    %2 = arith.cmpi ne, %1, %c0_i32_0 : i32
    scf.if %2 {
      %cst_10 = arith.constant 0.000000e+00 : f32
      %19 = vector.broadcast %cst_10 : f32 to vector<1x8x128xf32>
      %c0_11 = arith.constant 0 : index
      %c0_12 = arith.constant 0 : index
      %c0_13 = arith.constant 0 : index
      %20 = vector.load %arg4[%c0_11, %c0_12, %c0_13] : memref<1x8x128xf32, #tpu.memory_space<vmem>>, vector<1x8x128xf32>
      tpu.vector_store %arg4[%c0_11, %c0_12, %c0_13], %19 {strides = array<i32>} : memref<1x8x128xf32, #tpu.memory_space<vmem>>, vector<1x8x128xf32>,
    } else {
    }
    %cst = arith.constant 0.000000e+00 : f32
    %3 = vector.broadcast %cst : f32 to vector<8x128xf32>
    %c0_i32_1 = arith.constant 0 : i32
    %c16_i32 = arith.constant 16 : i32
    %4 = arith.muli %c0_i32_1, %c16_i32 : i32
    %5 = tpu.assume_multiple %4, 16 : i32
    %6 = arith.index_cast %5 : i32 to index
    %c0 = arith.constant 0 : index
    %7 = vector.load %arg2[%6, %c0] : memref<16x128xf32, #tpu.memory_space<vmem>>, vector<16x128xf32>
    %8 = arith.index_cast %5 : i32 to index
    %c0_2 = arith.constant 0 : index
    %9 = vector.load %arg3[%8, %c0_2] : memref<16x128xf32, #tpu.memory_space<vmem>>, vector<16x128xf32>
    %10 = arith.subf %7, %9 : vector<16x128xf32>
    %11 = arith.mulf %10, %10 : vector<16x128xf32>
    %12 = vector.shape_cast %11 : vector<16x128xf32> to vector<2x8x128xf32>
    %cst_3 = arith.constant dense<0.000000e+00> : vector<8x128xf32>
    %13 = vector.multi_reduction <add>, %12, %cst_3 [0] : vector<2x8x128xf32> to vector<8x128xf32>
    %14 = arith.addf %3, %13 : vector<8x128xf32>
    %c1_i32 = arith.constant 1 : i32
    %c0_4 = arith.constant 0 : index
    %c0_5 = arith.constant 0 : index
    %c0_6 = arith.constant 0 : index
    %15 = vector.load %arg4[%c0_4, %c0_5, %c0_6] : memref<1x8x128xf32, #tpu.memory_space<vmem>>, vector<1x8x128xf32>
    %16 = vector.shape_cast %14 : vector<8x128xf32> to vector<1x8x128xf32>
    %17 = arith.addf %15, %16 : vector<1x8x128xf32>
    %c0_7 = arith.constant 0 : index
    %c0_8 = arith.constant 0 : index
    %c0_9 = arith.constant 0 : index
    %18 = vector.load %arg4[%c0_7, %c0_8, %c0_9] : memref<1x8x128xf32, #tpu.memory_space<vmem>>, vector<1x8x128xf32>
    tpu.vector_store %arg4[%c0_7, %c0_8, %c0_9], %17 {strides = array<i32>} : memref<1x8x128xf32, #tpu.memory_space<vmem>>, vector<1x8x128xf32>,
    return
  }
  func.func @transform_0(%arg0: i32, %arg1: i32) -> (i32, i32) {
    %c1_i32 = arith.constant 1 : i32
    %0 = arith.muli %arg0, %c1_i32 : i32
    %1 = arith.addi %0, %arg1 : i32
    %c0_i32 = arith.constant 0 : i32
    %c0_i32_0 = arith.constant 0 : i32
    return %1, %c0_i32 : i32, i32
  }
  func.func @transform_1(%arg0: i32, %arg1: i32) -> (i32, i32) {
    %c1_i32 = arith.constant 1 : i32
    %0 = arith.muli %arg0, %c1_i32 : i32
    %1 = arith.addi %0, %arg1 : i32
    %c0_i32 = arith.constant 0 : i32
    %c0_i32_0 = arith.constant 0 : i32
    return %1, %c0_i32 : i32, i32
  }
  func.func @transform_2(%arg0: i32, %arg1: i32) -> (i32, i32, i32) {
    %c0_i32 = arith.constant 0 : i32
    %c0_i32_0 = arith.constant 0 : i32
    %c0_i32_1 = arith.constant 0 : i32
    return %arg0, %c0_i32, %c0_i32_0 : i32, i32, i32
  }
}

</mosaic_0001>

<bundles_post_ra>
// kernel: tpu_custom_call.1
= control target key start
LH: loop header
LB: loop body
LE: loop exit
PB: predicated region body
PF: predicated region fallthrough
CT: control target
= control target key end

     0   :  { %7 = vsyncpa [#allocation3], 0  ;;  %s220_s0 = inlined_call_operand.hbm [shape: f32[16,128], index: 0, kind: input, shape index: {}]   ;;  %s221_s1 = inlined_call_operand.hbm [shape: f32[16,128], index: 1, kind: input, shape index: {}]   ;;  %s222_s2 = inlined_call_operand.hbm [shape: f32[1,8,128], index: 2, kind: output, shape index: {}]  }
   0x1   :  { %8 = vsyncpa [#allocation6], 0 }
   0x2   :  { %9 = vsyncpa [#allocation4], 0  ;;  %s164_s9 = smov [#allocation2]   ;;  %s92_s13 = scalar_lea.hbm %s220_s0, 256 }
   0x3   :  { %s19_s10 = sshll.u32 %s164_s9, 4  ;;  %p93_p0 = scmp.ne.s32.totalorder %s220_s0, %s92_s13  ;;  %s20_s10 = int_to_ptr.vmem [resolvable:$true] %s19_s10 }
   0x4   :  { %p96_p1 = scmp.lt.u32.totalorder %s92_s13, %s220_s0 }
   0x6   :  { %p98_p2 = pnand %p96_p1, %p93_p0 }
   0x8   :  { %101 = shalt.err (!%p98_p2)
}
   0x9   :  { %s102_s18 = scalar_lea.vmem %s20_s10, 256  ;;  %p107_p4 = scmp.lt.s32.totalorder %s20_s10, %s20_s10 }
   0xa   :  { %p103_p3 = scmp.ne.s32.totalorder %s20_s10, %s102_s18  ;;  %p108_p5 = scmp.lt.s32.totalorder %s102_s18, %s102_s18 }
   0xc   :  { %p109_p6 = por %p108_p5, %p107_p4 }
   0xe   :  { %p110_p7 = pnand %p109_p6, %p103_p3 }
  0x10   :  { %113 = shalt.err (!%p110_p7)
}
  0x11   :  { %s165_s19 = smov 128   ;;  %s166_s20 = smov 8  }
  0x12   :  { %25 = dma.hbm_to_vmem [thread:$0]  %s220_s0, 256, %s20_s10, [#allocation3], %s165_s19, %s165_s19, %s166_s20  }
  0x13   :  { %s167_s23 = smov [#allocation5]   ;;  %s114_s27 = scalar_lea.hbm %s221_s1, 256 }
  0x14   :  { %s35_s24 = sshll.u32 %s167_s23, 4  ;;  %p115_p8 = scmp.ne.s32.totalorder %s221_s1, %s114_s27  ;;  %s36_s24 = int_to_ptr.vmem [resolvable:$true] %s35_s24 }
  0x15   :  { %p118_p9 = scmp.lt.u32.totalorder %s114_s27, %s221_s1 }
  0x17   :  { %p120_p10 = pnand %p118_p9, %p115_p8 }
  0x19   :  { %123 = shalt.err (!%p120_p10)
}
  0x1a   :  { %s124_s4 = scalar_lea.vmem %s36_s24, 256  ;;  %p129_p12 = scmp.lt.s32.totalorder %s36_s24, %s36_s24 }
  0x1b   :  { %p125_p11 = scmp.ne.s32.totalorder %s36_s24, %s124_s4  ;;  %p130_p13 = scmp.lt.s32.totalorder %s124_s4, %s124_s4 }
  0x1d   :  { %p131_p0 = por %p130_p13, %p129_p12 }
  0x1f   :  { %p132_p1 = pnand %p131_p0, %p125_p11 }
  0x21   :  { %135 = shalt.err (!%p132_p1)
}
  0x22   :  { %41 = dma.hbm_to_vmem [thread:$0]  %s221_s1, 256, %s36_s24, [#allocation6], %s165_s19, %s165_s19, %s166_s20  }
  0x23   :  { %158 = dma.done.wait [#allocation3], 256  }
  0x24   :  { %159 = vsyncadd [#allocation3], 4294967040 }
  0x25   :  { %160 = dma.done.wait [#allocation6], 256  }
  0x26   :  { %161 = vsyncadd [#allocation6], 4294967040  ;;  %v57_v0 = vld [vmem:[#allocation2] sm:$0xff]  ;;  %v58_v1 = vld [vmem:[#allocation2 + $0x8] sm:$0xff]  ;;  %s168_s6 = smov [#allocation7]  }
  0x27   :  { %v59_v2 = vld [vmem:[#allocation5] sm:$0xff]  ;;  %v60_v3 = vld [vmem:[#allocation5 + $0x8] sm:$0xff]  ;;  %s76_s7 = sshll.u32 %s168_s6, 4  ;;  %s77_s7 = int_to_ptr.vmem [resolvable:$true] %s76_s7 }
  0x28   :  { %v61_v4 = vsub.f32 %v57_v0, %v59_v2  ;;  %v62_v5 = vsub.f32 %v58_v1, %v60_v3  ;;  %s136_s8 = scalar_lea.vmem %s77_s7, 128  ;;  %p141_p3 = scmp.lt.s32.totalorder %s77_s7, %s77_s7 }
  0x29   :  { %p137_p2 = scmp.ne.s32.totalorder %s77_s7, %s136_s8  ;;  %p142_p4 = scmp.lt.s32.totalorder %s136_s8, %s136_s8 }
  0x2a   :  { %v63_v6 = vmul.f32 %v61_v4, %v61_v4  ;;  %v64_v7 = vmul.f32 %v62_v5, %v62_v5 }
  0x2b   :  { %p143_p5 = por %p142_p4, %p141_p3 }
  0x2c   :  { %v65_v8 = vadd.f32 %v64_v7, %v63_v6 }
  0x2d   :  { %p144_p6 = pnand %p143_p5, %p137_p2 }
  0x2e   :  { %69 = vst [vmem:[#allocation7] sm:$0xff] %v65_v8 }
  0x2f   :  { %147 = shalt.err (!%p144_p6)
}
  0x30   :  { %s148_s10 = scalar_lea.hbm %s222_s2, 128 }
  0x31   :  { %p149_p7 = scmp.ne.s32.totalorder %s222_s2, %s148_s10  ;;  %p152_p8 = scmp.lt.u32.totalorder %s148_s10, %s222_s2 }
  0x33   :  { %p154_p9 = pnand %p152_p8, %p149_p7 }
  0x35   :  { %157 = shalt.err (!%p154_p9)
}
  0x36   :  { %79 = dma.vmem_to_hbm [thread:$0]  %s77_s7, 128, %s222_s2, [#allocation4]  }
  0x37   :  { %162 = dma.done.wait [#allocation4], 128  }
  0x38   :  { %163 = vsyncadd [#allocation4], 4294967168 }
  0x39   :  { %83 = vsyncpa [#allocation3], 1 }
  0x3a   :  { %84 = vsyncpa [#allocation6], 1 }
  0x3b   :  { %85 = vsyncpa [#allocation4], 1 }

</bundles_post_ra>
